<compile_context>
chip_gen: v6e
topology: v6e:2x2x1
jax: 0.10.0
libtpu: 0.0.40
codegen_flags: <defaults>
</compile_context>

<pallas_src>
import jax
import jax.numpy as jnp
from jax import lax
from jax.experimental import pallas as pl
from jax.experimental.pallas import tpu as pltpu


def _haar_dwt_kernel(x_ref, o_ref):
    # x_ref: (cblk*h2, 2W)   row = (image, h2-index), cols = [even row | odd row]
    # o_ref: (cblk, 4, h2, w2)  subbands ordered [cA, cH, cV, cD]
    cblk, _, h2, w2 = o_ref.shape
    w = 2 * w2
    out_dt = o_ref.dtype

    x = x_ref[...]
    # TODO(synk): if W % 128 != 0 the odd-row half starts at a non-aligned
    # lane offset and Mosaic inserts one XLU relayout for that operand; the
    # XLU is otherwise idle in this kernel so it stays off the critical path.
    xe = x[:, :w]                  # even image rows
    xo = x[:, w:]                  # odd image rows
    s = xe + xo                    # height lowpass  (unnormalized)  -- VPU
    d = xe - xo                    # height highpass (unnormalized)  -- VPU

    # Width-pass decimation matrices with the 1/2 normalization folded in
    # (entries are 0 / +-0.5, exact in both f32 and bf16).  Generated per
    # step from iota compares: ~3*W*W/2 cheap VPU ops, negligible vs the
    # block, and megacore-safe (every core / grid step sees valid filters).
    fdt = x.dtype
    i = lax.broadcasted_iota(jnp.int32, (w, w2), 0)
    k2 = 2 * lax.broadcasted_iota(jnp.int32, (w, w2), 1)
    even = i == k2
    odd = i == (k2 + 1)
    half = jnp.asarray(0.5, fdt)
    zero = jnp.asarray(0.0, fdt)
    m_lo = jnp.where(even | odd, half, zero)                    # 0.5*(x[2k]+x[2k+1])
    m_hi = jnp.where(even, half, jnp.where(odd, -half, zero))   # 0.5*(x[2k]-x[2k+1])

    prec = (lax.Precision.HIGHEST if x.dtype == jnp.float32
            else lax.Precision.DEFAULT)

    def dec(v, m):
        # (cblk*h2, W) @ (W, w2) -> (cblk, h2, w2); result starts at lane 0.
        y = jnp.dot(v, m, precision=prec, preferred_element_type=jnp.float32)
        return y.reshape(cblk, h2, w2).astype(out_dt)

    o_ref[:, 0] = dec(s, m_lo)     # cA
    o_ref[:, 1] = dec(d, m_lo)     # cH
    o_ref[:, 2] = dec(s, m_hi)     # cV
    o_ref[:, 3] = dec(d, m_hi)     # cD


def _block_vmem_bytes(cblk, h2, w, itemsize):
    """Conservative VMEM footprint of one grid step: double-buffered in/out
    blocks + live in-kernel temporaries + the generated filter matrices."""
    rup = lambda a, m: -(-a // m) * m
    w2 = w // 2
    rblk = cblk * h2
    in_blk = rup(rblk, 8) * rup(2 * w, 128) * itemsize
    out_blk = cblk * 4 * rup(h2, 8) * rup(w2, 128) * itemsize
    temps = (rup(rblk, 8) * (rup(2 * w, 128) + 2 * rup(w, 128)) * itemsize  # x, s, d
             + 4 * rup(rblk, 8) * rup(w2, 128) * 4                          # f32 dot results
             + 2 * rup(w, 8) * rup(w2, 128) * 4)                            # filters
    return 2 * (in_blk + out_blk) + temps


def _choose_channel_block(n_imgs, h, w, itemsize, budget_bytes):
    """How many (batch, channel) images to process per grid step."""
    h2 = h // 2
    divs = [d for d in range(1, n_imgs + 1) if n_imgs % d == 0]
    # Input-block sublane dim (d*h2) must be a multiple of 8 unless the block
    # spans the whole array (a full-array block is always legal).
    shape_ok = [d for d in divs if (d * h2) % 8 == 0 or d == n_imgs]
    fits = [d for d in shape_ok
            if _block_vmem_bytes(d, h2, w, itemsize) <= budget_bytes]
    if not fits:
        # Nothing fits the budget (pathological shapes): take the smallest
        # legal block and rely on the compiler's VMEM limit.
        return min(shape_ok)
    # Prefer the largest block that still gives an EVEN number of grid steps
    # (>= 2), so the 'parallel' axis shards evenly across v7x's two
    # TensorCores; on single-TC v5e/v6e the extra step costs ~0.35 us.
    even_steps = [d for d in fits if (n_imgs // d) % 2 == 0]
    return max(even_steps) if even_steps else max(fits)


def _vmem_limit_bytes():
    try:
        cap = int(pltpu.get_tpu_info().vmem_capacity_bytes)
    except Exception:
        cap = 64 << 20            # assume the smallest (v7x-sized) part
    # 48 MiB on 64-MiB parts (v7x), 96 MiB on 128-MiB parts (v5e/v6e).
    return int(min((cap * 3) // 4, 96 << 20))


def wavelet_layer(x):
    """Equivalent of WaveletLayer(wavelet='haar').forward for NCHW input."""
    b, c, h, w = x.shape
    # TODO(synk): odd H/W needs true 'symmetric' padding; for even dims the
    # pad amount is zero so semantics match pytorch_wavelets exactly.
    assert h % 2 == 0 and w % 2 == 0, "Haar DWT kernel assumes even H and W"
    h2, w2 = h // 2, w // 2
    n_imgs = b * c

    vmem_limit = _vmem_limit_bytes()
    cblk = _choose_channel_block(n_imgs, h, w, x.dtype.itemsize,
                                 budget_bytes=(vmem_limit * 7) // 8)
    rblk = cblk * h2
    n_blocks = n_imgs // cblk

    x2 = x.reshape(n_imgs * h2, 2 * w)   # free reshape: [even row | odd row]

    n_rows = n_imgs * h2
    flops = 8 * n_rows * w * w2 + 2 * n_rows * w            # 4 MXU dots + 2 VPU passes
    bytes_accessed = 2 * n_imgs * h * w * x.dtype.itemsize  # read x + write out

    out = pl.pallas_call(
        _haar_dwt_kernel,
        out_shape=jax.ShapeDtypeStruct((n_imgs, 4, h2, w2), x.dtype),
        grid=(n_blocks,),
        in_specs=[pl.BlockSpec((rblk, 2 * w), lambda i: (i, 0))],
        out_specs=pl.BlockSpec((cblk, 4, h2, w2), lambda i: (i, 0, 0, 0)),
        compiler_params=pltpu.CompilerParams(
            dimension_semantics=("parallel",),
            vmem_limit_bytes=vmem_limit,
        ),
        cost_estimate=pl.CostEstimate(
            flops=int(flops), transcendentals=0,
            bytes_accessed=int(bytes_accessed)),
    )(x2)

    return out.reshape(b, 4 * c, h2, w2)


def _reference(x):
    """Pure-JAX reference of the same Haar DWT layer (sanity check)."""
    a = x[:, :, 0::2, 0::2]
    b = x[:, :, 0::2, 1::2]
    c = x[:, :, 1::2, 0::2]
    d = x[:, :, 1::2, 1::2]
    cA = (a + b + c + d) * 0.5
    cH = (a + b - c - d) * 0.5
    cV = (a - b + c - d) * 0.5
    cD = (a - b - c + d) * 0.5
    comb = jnp.stack([cA, cH, cV, cD], axis=2)          # (B, C, 4, H2, W2)
    bsz, ch, _, h2, w2 = comb.shape
    return comb.reshape(bsz, ch * 4, h2, w2)


if __name__ == "__main__":
    key = jax.random.PRNGKey(0)
    x = jax.random.normal(key, (2, 4, 16, 16), dtype=jnp.float32)

    out = wavelet_layer(x)
    out = jax.block_until_ready(out)

    assert out.shape == (2, 16, 8, 8), out.shape
    ref = _reference(x)
    assert jnp.allclose(out, ref, rtol=1e-5, atol=1e-5), \
        float(jnp.max(jnp.abs(out - ref)))

    print("KERNEL_OK")
</pallas_src>

<mosaic_0001>
module attributes {stable_mosaic.version = 11 : i64} {
  func.func @_haar_dwt_kernel(%arg0: i32, %arg1: memref<32x32xf32, #tpu.memory_space<vmem>>, %arg2: memref<4x4x8x8xf32, #tpu.memory_space<vmem>>) attributes {dimension_semantics = [#tpu.dimension_semantics<parallel>], iteration_bounds = array<i64: 2>, scalar_prefetch = 0 : i64, scratch_operands = 0 : i64, tpu.core_type = #tpu.core_type<tc>, window_params = [{transform_indices = @transform_0, window_bounds = array<i64: 32, 32>}, {transform_indices = @transform_1, window_bounds = array<i64: 4, 4, 8, 8>}]} {
    %c0 = arith.constant 0 : index
    %c0_0 = arith.constant 0 : index
    %0 = vector.load %arg1[%c0, %c0_0] : memref<32x32xf32, #tpu.memory_space<vmem>>, vector<32x32xf32>
    %1 = vector.extract_strided_slice %0 {offsets = [0, 0], sizes = [32, 16], strides = [1, 1]} : vector<32x32xf32> to vector<32x16xf32>
    %2 = vector.extract_strided_slice %0 {offsets = [0, 16], sizes = [32, 16], strides = [1, 1]} : vector<32x32xf32> to vector<32x16xf32>
    %3 = arith.addf %1, %2 : vector<32x16xf32>
    %4 = arith.subf %1, %2 : vector<32x16xf32>
    %5 = tpu.iota {dimensions = array<i32: 0>} : vector<16x8xi32>
    %6 = tpu.iota {dimensions = array<i32: 1>} : vector<16x8xi32>
    %c2_i32 = arith.constant 2 : i32
    %7 = vector.broadcast %c2_i32 : i32 to vector<16x8xi32>
    %8 = arith.muli %7, %6 : vector<16x8xi32>
    %9 = arith.cmpi eq, %5, %8 : vector<16x8xi32>
    %c1_i32 = arith.constant 1 : i32
    %10 = vector.broadcast %c1_i32 : i32 to vector<16x8xi32>
    %11 = arith.addi %8, %10 : vector<16x8xi32>
    %12 = arith.cmpi eq, %5, %11 : vector<16x8xi32>
    %13 = arith.ori %9, %12 : vector<16x8xi1>
    %cst = arith.constant 5.000000e-01 : f32
    %cst_1 = arith.constant 0.000000e+00 : f32
    %14 = vector.broadcast %cst : f32 to vector<16x8xf32>
    %15 = vector.broadcast %cst_1 : f32 to vector<16x8xf32>
    %16 = arith.select %13, %14, %15 : vector<16x8xi1>, vector<16x8xf32>
    %cst_2 = arith.constant 0.000000e+00 : f32
    %cst_3 = arith.constant 5.000000e-01 : f32
    %17 = arith.subf %cst_2, %cst_3 : f32
    %cst_4 = arith.constant 0.000000e+00 : f32
    %18 = vector.broadcast %17 : f32 to vector<16x8xf32>
    %19 = vector.broadcast %cst_4 : f32 to vector<16x8xf32>
    %20 = arith.select %12, %18, %19 : vector<16x8xi1>, vector<16x8xf32>
    %cst_5 = arith.constant 5.000000e-01 : f32
    %21 = vector.broadcast %cst_5 : f32 to vector<16x8xf32>
    %22 = arith.select %9, %21, %20 : vector<16x8xi1>, vector<16x8xf32>
    %cst_6 = arith.constant dense<0.000000e+00> : vector<32x8xf32>
    %23 = tpu.matmul %3, %16, %cst_6 {dimension_numbers = #tpu.dot_dimension_numbers<[1], [0], [0], [1], [0, 0, 1, 1], [], []>, precision = #tpu.contract_precision<fp32>} : vector<32x16xf32>, vector<16x8xf32>, vector<32x8xf32> -> vector<32x8xf32>
    %24 = vector.shape_cast %23 : vector<32x8xf32> to vector<4x8x8xf32>
    %c0_7 = arith.constant 0 : index
    %c0_8 = arith.constant 0 : index
    %c0_9 = arith.constant 0 : index
    %c0_10 = arith.constant 0 : index
    %25 = vector.load %arg2[%c0_7, %c0_8, %c0_9, %c0_10] : memref<4x4x8x8xf32, #tpu.memory_space<vmem>>, vector<4x1x8x8xf32>
    %26 = vector.shape_cast %25 : vector<4x1x8x8xf32> to vector<4x8x8xf32>
    %27 = vector.shape_cast %24 : vector<4x8x8xf32> to vector<4x1x8x8xf32>
    tpu.vector_store %arg2[%c0_7, %c0_8, %c0_9, %c0_10], %27 {strides = array<i32>} : memref<4x4x8x8xf32, #tpu.memory_space<vmem>>, vector<4x1x8x8xf32>,
    %cst_11 = arith.constant dense<0.000000e+00> : vector<32x8xf32>
    %28 = tpu.matmul %4, %16, %cst_11 {dimension_numbers = #tpu.dot_dimension_numbers<[1], [0], [0], [1], [0, 0, 1, 1], [], []>, precision = #tpu.contract_precision<fp32>} : vector<32x16xf32>, vector<16x8xf32>, vector<32x8xf32> -> vector<32x8xf32>
    %29 = vector.shape_cast %28 : vector<32x8xf32> to vector<4x8x8xf32>
    %c0_12 = arith.constant 0 : index
    %c1 = arith.constant 1 : index
    %c0_13 = arith.constant 0 : index
    %c0_14 = arith.constant 0 : index
    %30 = vector.load %arg2[%c0_12, %c1, %c0_13, %c0_14] : memref<4x4x8x8xf32, #tpu.memory_space<vmem>>, vector<4x1x8x8xf32>
    %31 = vector.shape_cast %30 : vector<4x1x8x8xf32> to vector<4x8x8xf32>
    %32 = vector.shape_cast %29 : vector<4x8x8xf32> to vector<4x1x8x8xf32>
    tpu.vector_store %arg2[%c0_12, %c1, %c0_13, %c0_14], %32 {strides = array<i32>} : memref<4x4x8x8xf32, #tpu.memory_space<vmem>>, vector<4x1x8x8xf32>,
    %cst_15 = arith.constant dense<0.000000e+00> : vector<32x8xf32>
    %33 = tpu.matmul %3, %22, %cst_15 {dimension_numbers = #tpu.dot_dimension_numbers<[1], [0], [0], [1], [0, 0, 1, 1], [], []>, precision = #tpu.contract_precision<fp32>} : vector<32x16xf32>, vector<16x8xf32>, vector<32x8xf32> -> vector<32x8xf32>
    %34 = vector.shape_cast %33 : vector<32x8xf32> to vector<4x8x8xf32>
    %c0_16 = arith.constant 0 : index
    %c2 = arith.constant 2 : index
    %c0_17 = arith.constant 0 : index
    %c0_18 = arith.constant 0 : index
    %35 = vector.load %arg2[%c0_16, %c2, %c0_17, %c0_18] : memref<4x4x8x8xf32, #tpu.memory_space<vmem>>, vector<4x1x8x8xf32>
    %36 = vector.shape_cast %35 : vector<4x1x8x8xf32> to vector<4x8x8xf32>
    %37 = vector.shape_cast %34 : vector<4x8x8xf32> to vector<4x1x8x8xf32>
    tpu.vector_store %arg2[%c0_16, %c2, %c0_17, %c0_18], %37 {strides = array<i32>} : memref<4x4x8x8xf32, #tpu.memory_space<vmem>>, vector<4x1x8x8xf32>,
    %cst_19 = arith.constant dense<0.000000e+00> : vector<32x8xf32>
    %38 = tpu.matmul %4, %22, %cst_19 {dimension_numbers = #tpu.dot_dimension_numbers<[1], [0], [0], [1], [0, 0, 1, 1], [], []>, precision = #tpu.contract_precision<fp32>} : vector<32x16xf32>, vector<16x8xf32>, vector<32x8xf32> -> vector<32x8xf32>
    %39 = vector.shape_cast %38 : vector<32x8xf32> to vector<4x8x8xf32>
    %c0_20 = arith.constant 0 : index
    %c3 = arith.constant 3 : index
    %c0_21 = arith.constant 0 : index
    %c0_22 = arith.constant 0 : index
    %40 = vector.load %arg2[%c0_20, %c3, %c0_21, %c0_22] : memref<4x4x8x8xf32, #tpu.memory_space<vmem>>, vector<4x1x8x8xf32>
    %41 = vector.shape_cast %40 : vector<4x1x8x8xf32> to vector<4x8x8xf32>
    %42 = vector.shape_cast %39 : vector<4x8x8xf32> to vector<4x1x8x8xf32>
    tpu.vector_store %arg2[%c0_20, %c3, %c0_21, %c0_22], %42 {strides = array<i32>} : memref<4x4x8x8xf32, #tpu.memory_space<vmem>>, vector<4x1x8x8xf32>,
    return
  }
  func.func @transform_0(%arg0: i32) -> (i32, i32) {
    %c0_i32 = arith.constant 0 : i32
    %c0_i32_0 = arith.constant 0 : i32
    return %arg0, %c0_i32 : i32, i32
  }
  func.func @transform_1(%arg0: i32) -> (i32, i32, i32, i32) {
    %c0_i32 = arith.constant 0 : i32
    %c0_i32_0 = arith.constant 0 : i32
    %c0_i32_1 = arith.constant 0 : i32
    %c0_i32_2 = arith.constant 0 : i32
    return %arg0, %c0_i32, %c0_i32_0, %c0_i32_1 : i32, i32, i32, i32
  }
}

</mosaic_0001>

<bundles_post_ra>
// kernel: tpu_custom_call.1
= control target key start
LH: loop header
LB: loop body
LE: loop exit
PB: predicated region body
PF: predicated region fallthrough
CT: control target
= control target key end

     0   :  { %6 = vsyncpa [#allocation3], 0  ;;  %s3686_s0 = inlined_call_operand.vmem [shape: f32[64,32], index: 0, kind: input, shape index: {}]   ;;  %s3687_s1 = inlined_call_operand.hbm [shape: f32[8,4,8,8], index: 1, kind: output, shape index: {}]  }
   0x1   :  { %8 = vsyncpa [#allocation3 + $0x1], 0  ;;  %s3136_s6 = smov 0   ;;  %s3138_s7 = smov 0  }
   0x2   :  { %s3140_s8 = smov 0   ;;  %s3142_s9 = smov 0  }
   0x3 LB: > { %s3157_s10 = sadd.s32 4294967295, %s3118_s9   ;;  %s2591_s11 = sadd.s32 4294967294, %s3118_s9   ;;  %s3118_s9 = sphi %s3142_s9, %s3697_s9   ;;  %s3114_s8 = sphi %s3140_s8, %s3696_s8   ;;  %s3110_s7 = sphi %s3138_s7, %s3695_s7   ;;  %s3106_s6 = sphi %s3136_s6, %s3694_s6  }
   0x4   : > { %s3161_s12 = sadd.s32 1, %s3118_s9   ;;  %s47_s13 = sadd.s32 1, %s3114_s8 }
   0x5   : > { %s44_s14 = ssub.s32 %s3118_s9, %s3161_s12  ;;  %p57_p0 = scmp.ne.s32.totalorder %s3114_s8, %s3110_s7 }
   0x6   : > { %p45_p1 = scmp.eq.s32.totalorder %s44_s14, 0  ;;  %p58_p2 = scmp.eq.s32.totalorder %s3157_s10, 1 }
   0x7   : > { %p63_p3 = scmp.ne.s32.totalorder %s3110_s7, %s3106_s6  ;;  %p64_p4 = scmp.eq.s32.totalorder %s2591_s11, 1 }
   0x8   : > { %s3172_s15 = scalar_select %p45_p1, %s3114_s8, %s47_s13  }
   0x9   : > { %p3174_p5 = por %p58_p2, %p57_p0  ;;  %p3178_p6 = por %p64_p4, %p63_p3 }
   0xa   : > { %p2594_p7 = scmp.ge.s32.totalorder %s3118_s9, 1  ;;  %p91_p8 = scmp.lt.s32.totalorder %s3118_s9, 3 }
   0xc   : > { %p92_p9 = pnand %p2594_p7, %p91_p8 }
   0xd   : > { %s2596_s18 = sshll.u32 (!%p92_p9), %s3157_s10, 2  ;;  %s3120_s23 = smov (!%p92_p9), 112  }
   0xe   : > { %95 = sbr.rel (%p92_p9) target bundleno = 460 (0x1cc), region = 24  ;;  %p112_p10 = scmp.lt.s32.totalorder (!%p92_p9), %s2596_s18, 7 }
   0xf   : > { %s108_s24 = sand.u32 (!%p92_p9), 1, %s3110_s7   ;;  %s2629_s27 = sshll.u32 (!%p92_p9), %s3157_s10, 11 }
  0x10   : > { %s2595_s25 = sshll.u32 (!%p92_p9), %s108_s24, 7  ;;  %s3636_s2 = scalar_lea.hbm (!%p92_p9), %s3687_s1, %s2629_s27 }
  0x11   : > { %s3601_s26 = scalar_lea.vmem (!%p92_p9), [#allocation2], %s2595_s25  ;;  %s3646_s3 = scalar_lea.sflag (!%p92_p9), [#allocation3], %s108_s24 }
  0x12   : > { %s2529_s28 = sshll.u32 (!%p92_p9), %s3601_s26, 4  ;;  %s3123_s5 = smov (!%p92_p9), [#allocation2]   ;;  %s3638_s28 = int_to_ptr.vmem [resolvable:$true] %s2529_s28 }
  0x13   : > { %v146_v0 = vlaneseq  ;;  %s3699_s18 = smov (!%p112_p10, %s2596_s18), 7  ;;  %v3121_v11 = vmov 0.0   ;;  %v3122_v20 = vmov 0.5   ;;  %vm165_vm6 = vcmask 130048   ;;  %s3058_s4 = scalar_lea.vmem %s3638_s28, 2048 }
  0x14   : > { %s2597_s19 = sshll.u32 %s3699_s18, 3  ;;  %vm754_vm7 = vcmask 64512   ;;  %p3059_p11 = scmp.ne.s32.totalorder %s3638_s28, %s3058_s4 }
  0x15   : > { %v147_v1 = vshrl.u32 %v146_v0, 7  ;;  %v150_v2 = vand.u32 127, %v146_v0  ;;  %s115_s22 = scalar_lea.vmem %s3686_s0, %s2597_s19  ;;  %s3062_s10 = sshll.u32 %s3123_s5, 4  ;;  %s3063_s10 = int_to_ptr.vmem [resolvable:$false] %s3062_s10 }
  0x16   : > { %v3188_v6 = vld [vmem:[%s115_s22 + $0x10] sm:$0xff]  ;;  %v3190_v7 = vld [vmem:[%s115_s22] sm:$0xff]  ;;  %v3194_v8 = vld [vmem:[%s115_s22 + $0x18] sm:$0xff]  ;;  %p3060_p12 = pnand %p3059_p11, %p3174_p5  ;;  %s3064_s11 = scalar_lea.vmem %s3063_s10, 4096 }
  0x17   : > { %v148_v3 = vadd.s32 8, %v147_v1  ;;  %v151_v4 = vmul.u32 2, %v150_v2  ;;  %130 = vrot.lane.b32.xlu1 %v3188_v6, %s3120_s23  ;;  %126 = vrot.lane.b32.xlu0 %v3190_v7, %s3120_s23  ;;  %v3196_v9 = vld [vmem:[%s115_s22 + $0x8] sm:$0xff]  ;;  %p3065_p0 = scmp.lt.s32.totalorder %s3638_s28, %s3063_s10  ;;  %p3066_p1 = scmp.lt.s32.totalorder %s3064_s11, %s3058_s4 }
  0x18   : > { %p3061_p13 = pneg %p3060_p12 }
  0x19   : > { %vm152_vm0 = vcmp.eq.s32.totalorder %v147_v1, %v151_v4  ;;  %v154_v5 = vadd.s32 1, %v151_v4  ;;  %vm153_vm1 = vcmp.eq.s32.totalorder %v148_v3, %v151_v4  ;;  %p3067_p2 = por %p3066_p1, %p3065_p0 }
  0x1b   : > { %vm155_vm2 = vcmp.eq.s32.totalorder %v147_v1, %v154_v5  ;;  %vm156_vm3 = vcmp.eq.s32.totalorder %v148_v3, %v154_v5  ;;  %132 = vrot.lane.b32.xlu1 %v3194_v8, %s3120_s23  ;;  %128 = vrot.lane.b32.xlu0 %v3196_v9, %s3120_s23  ;;  %p3068_p3 = pnand %p3067_p2, %p3061_p13 }
  0x1c   : > { %vm3199_vm4 = vmor %vm152_vm0, %vm155_vm2  ;;  %v161_v12 = vsel %vm155_vm2, -0.5, %v3121_v11  ;;  %v162_v13 = vsel %vm156_vm3, -0.5, %v3121_v11 }
  0x1d   : > { %vm3203_vm5 = vmor %vm153_vm1, %vm156_vm3  ;;  %v3208_v15 = vsel %vm152_vm0, 0.5, %v161_v12  ;;  %v3210_v16 = vsel %vm153_vm1, 0.5, %v162_v13  ;;  %v159_v17 = vsel %vm3199_vm4, 0.5, %v3121_v11 }
  0x1e   : > { %v160_v18 = vsel %vm3203_vm5, 0.5, %v3121_v11  ;;  %v3216_v19 = vsub.f32 %v159_v17, %v159_v17  ;;  %2774 = vmatprep.subr.msk.mxu0 %vm3203_vm5, %v3122_v20 }
  0x1f   : > { %v3223_v21 = vsub.f32 %v160_v18, %v160_v18  ;;  %2775 = vmatpush3.msk.msra.mxu0 %vm3203_vm5, %v3122_v20 }
  0x20   : > { %v3226_v22 = vand.u32 4294901760, %v3216_v19  ;;  %2776 = vmatprep.subr.msk.mxu0 %vm3199_vm4, %v3122_v20 }
  0x21   : > { %v3232_v23 = vand.u32 4294901760, %v3223_v21  ;;  %2777 = vmatpush3.msk.msra.mxu0 %vm3199_vm4, %v3122_v20 }
  0x22   : > { %v320_v24 = vsub.f32 %v3216_v19, %v3226_v22  ;;  %2794 = vmatprep.subr.mxu0 %v3223_v21 }
  0x23   : > { %v314_v25 = vsub.f32 %v3223_v21, %v3232_v23 }
  0x24   : > { %v3247_v27 = vand.u32 4294901760, %v320_v24 }
  0x25   : > { %v3245_v26 = vand.u32 4294901760, %v314_v25 }
  0x27   : > { %2784 = vmatprep.subr.mxu1 %v3245_v26 }
  0x28   : > { %2785 = vmatpush3.msra.mxu1 %v3245_v26 }
  0x29   : > { %2786 = vmatprep.subr.mxu1 %v3247_v27 }
  0x2a   : > { %2787 = vmatpush3.msra.mxu1 %v3247_v27 }
  0x2b   : > { %2804 = vmatprep.subr.msk.mxu1 %vm3203_vm5, %v3122_v20 }
  0x89   : > { %v131_v28 = vpop.permute.xlu1 %130  ;;  %v127_v29 = vpop.permute.xlu0 %126 }
  0x8a   : > { %v140_v30 = vadd.f32 %v131_v28, %v3188_v6  ;;  %v138_v31 = vadd.f32 %v127_v29, %v3190_v7  ;;  %v142_v55 = vsub.f32 %v3190_v7, %v127_v29  ;;  %v144_v61 = vsub.f32 %v3188_v6, %v131_v28 }
  0x8b   : > { %v3435_v29 = vsub.f32 %v3210_v16, %v3210_v16 }
  0x8c   : > { %v173_v32 = vsel %vm165_vm6, %v140_v30, 0  ;;  %v167_v33 = vsel %vm165_vm6, %v138_v31, 0  ;;  %v760_v62 = vsel %vm165_vm6, %v142_v55, 0  ;;  %v766_v3 = vsel %vm165_vm6, %v144_v61, 0 }
  0x8d   : > { %v3260_v34 = vand.u32 4294901760, %v173_v32  ;;  %v3262_v35 = vand.u32 4294901760, %v167_v33  ;;  %v133_v36 = vpop.permute.xlu1 %132  ;;  %v129_v37 = vpop.permute.xlu0 %128  ;;  %v3340_v0 = vand.u32 4294901760, %v760_v62  ;;  %v3359_v5 = vand.u32 4294901760, %v766_v3 }
  0x8e   : > { %v141_v38 = vadd.f32 %v133_v36, %v3194_v8  ;;  %v139_v39 = vadd.f32 %v129_v37, %v3196_v9  ;;  %v143_v59 = vsub.f32 %v3196_v9, %v129_v37  ;;  %v145_v1 = vsub.f32 %v3194_v8, %v133_v36 }
  0x8f   : > { %v3267_v40 = vsub.f32 %v173_v32, %v3260_v34  ;;  %v3270_v41 = vsub.f32 %v167_v33, %v3262_v35  ;;  %2788 = vmatprep.mubr.f32.mxu1 %v3262_v35  ;;  %v3362_v6 = vsub.f32 %v760_v62, %v3340_v0  ;;  %v3380_v11 = vsub.f32 %v766_v3, %v3359_v5 }
  0x90   : > { %v176_v42 = vsel %vm165_vm6, %v141_v38, 0  ;;  %v170_v43 = vsel %vm165_vm6, %v139_v39, 0  ;;  %v763_v2 = vsel %vm165_vm6, %v143_v59, 0  ;;  %v769_v7 = vsel %vm165_vm6, %v145_v1, 0 }
  0x91   : > { %v3275_v44 = vand.u32 4294901760, %v176_v42  ;;  %v3277_v45 = vand.u32 4294901760, %v170_v43  ;;  %v3280_v46 = vand.u32 4294901760, %v3270_v41  ;;  %v3283_v47 = vand.u32 4294901760, %v3267_v40 }
  0x92   : > { %v3353_v4 = vand.u32 4294901760, %v763_v2  ;;  %v3372_v8 = vand.u32 4294901760, %v769_v7  ;;  %v3385_v12 = vand.u32 4294901760, %v3362_v6  ;;  %v3406_v24 = vand.u32 4294901760, %v3380_v11 }
  0x93   : > { %v3286_v48 = vsub.f32 %v176_v42, %v3275_v44  ;;  %v3289_v49 = vsub.f32 %v170_v43, %v3277_v45  ;;  %2789 = vmatmul.mubr.f32.vlgmr.msra.gmra.mxu1 %v3277_v45  ;;  %v246_v50 = vsub.f32 %v3270_v41, %v3280_v46  ;;  %v266_v54 = vsub.f32 %v3267_v40, %v3283_v47 }
  0x94   : > { %2791 = vmatprep.mubr.f32.mxu1 %v3260_v34  ;;  %2805 = vmatpush3.msk.msra.mxu1 %vm3203_vm5, %v3122_v20  ;;  %v3375_v9 = vsub.f32 %v763_v2, %v3353_v4  ;;  %v3392_v13 = vsub.f32 %v769_v7, %v3372_v8  ;;  %v839_v18 = vsub.f32 %v3362_v6, %v3385_v12  ;;  %v3462_v36 = vand.u32 4294901760, %v3435_v29 }
  0x95   : > { %2806 = vmatprep.subr.msk.mxu1 %vm3199_vm4, %v3122_v20  ;;  %v3302_v51 = vand.u32 4294901760, %v3289_v49  ;;  %v3305_v52 = vand.u32 4294901760, %v3286_v48  ;;  %v3307_v53 = vand.u32 4294901760, %v246_v50  ;;  %v3328_v60 = vand.u32 4294901760, %v266_v54 }
  0x96   : > { %2807 = vmatpush3.msk.msra.mxu1 %vm3199_vm4, %v3122_v20  ;;  %v3395_v17 = vand.u32 4294901760, %v3375_v9  ;;  %v859_v28 = vsub.f32 %v3380_v11, %v3406_v24  ;;  %v3453_v32 = vsub.f32 %v3208_v15, %v3208_v15 }
  0x97   : > { %2792 = vmatmul.mubr.f32.gmra.mxu1 %v3275_v44  ;;  %v256_v56 = vsub.f32 %v3289_v49, %v3302_v51  ;;  %2824 = vmatprep.subr.msk.mxu1 %vm3203_vm5, %v3122_v20  ;;  %v276_v58 = vsub.f32 %v3286_v48, %v3305_v52 }
  0x98   : > { %2778 = vmatprep.mubr.f32.mxu0 %v3307_v53  ;;  %2808 = vmatprep.mubr.f32.mxu1 %v3280_v46  ;;  %v849_v25 = vsub.f32 %v3375_v9, %v3395_v17  ;;  %v3459_v33 = vand.u32 4294901760, %v859_v28  ;;  %v3473_v38 = vand.u32 4294901760, %v3453_v32 }
  0x99   : > { %v3323_v57 = vand.u32 4294901760, %v256_v56  ;;  %v3338_v63 = vand.u32 4294901760, %v276_v58 }
  0x9a   : > { %v3447_v30 = vand.u32 4294901760, %v849_v25 }
  0x9b   : > { %2779 = vmatmul.mubr.f32.vlgmr.msra.gmra.mxu0 %v3323_v57  ;;  %2809 = vmatmul.mubr.f32.vlgmr.msra.gmra.mxu1 %v3302_v51 }
  0x9c   : > { %2795 = vmatpush3.msra.mxu0 %v3223_v21  ;;  %2781 = vmatprep.mubr.f32.mxu0 %v3328_v60 }
  0x9d   : > { %2811 = vmatprep.mubr.f32.mxu1 %v3283_v47  ;;  %2796 = vmatprep.subr.mxu0 %v3216_v19 }
  0x9e   : > { %2797 = vmatpush3.msra.mxu0 %v3216_v19  ;;  %2825 = vmatpush3.msk.msra.mxu1 %vm3203_vm5, %v3122_v20 }
  0x9f   : > { %2782 = vmatmul.mubr.f32.gmra.mxu0 %v3338_v63  ;;  %2812 = vmatmul.mubr.f32.gmra.mxu1 %v3305_v52 }
  0xa0   : > { %2798 = vmatprep.mubr.f32.mxu0 %v3270_v41  ;;  %2828 = vmatprep.mubr.f32.mxu1 %v3262_v35 }
  0xa1   : > { %2826 = vmatprep.subr.msk.mxu1 %vm3199_vm4, %v3122_v20  ;;  %2814 = vmatprep.subr.mxu0 %v3232_v23 }
  0xa2   : > { %2827 = vmatpush3.msk.msra.mxu1 %vm3199_vm4, %v3122_v20 }
  0xa3   : > { %2799 = vmatmul.mubr.f32.vlgmr.msra.gmra.mxu0 %v3289_v49  ;;  %2829 = vmatmul.mubr.f32.vlgmr.msra.gmra.mxu1 %v3277_v45 }
  0xa4   : > { %2815 = vmatpush3.msra.mxu0 %v3232_v23  ;;  %2801 = vmatprep.mubr.f32.mxu0 %v3267_v40 }
  0xa5   : > { %2831 = vmatprep.mubr.f32.mxu1 %v3260_v34  ;;  %2816 = vmatprep.subr.mxu0 %v3226_v22 }
  0xa6   : > { %2817 = vmatpush3.msra.mxu0 %v3226_v22  ;;  %2844 = vmatprep.subr.mxu1 %v3245_v26 }
  0xa7   : > { %2802 = vmatmul.mubr.f32.gmra.mxu0 %v3286_v48  ;;  %2832 = vmatmul.mubr.f32.gmra.mxu1 %v3275_v44 }
  0xa8   : > { %2818 = vmatprep.mubr.f32.mxu0 %v3262_v35  ;;  %2845 = vmatpush3.msra.mxu1 %v3245_v26  ;;  %v3421_v26 = vand.u32 4294901760, %v3392_v13 }
  0xa9   : > { %2848 = vmatprep.mubr.f32.mxu1 %v3340_v0  ;;  %2846 = vmatprep.subr.mxu1 %v3247_v27 }
  0xaa   : > { %2834 = vmatprep.subr.msk.mxu0 %vm3203_vm5, %v3122_v20  ;;  %2847 = vmatpush3.msra.mxu1 %v3247_v27  ;;  %v3429_v27 = vand.u32 4294901760, %v839_v18  ;;  %v869_v31 = vsub.f32 %v3392_v13, %v3421_v26 }
  0xab   : > { %2819 = vmatmul.mubr.f32.vlgmr.msra.gmra.mxu0 %v3277_v45  ;;  %2849 = vmatmul.mubr.f32.vlgmr.msra.gmra.mxu1 %v3353_v4 }
  0xac   : > { %2835 = vmatpush3.msk.msra.mxu0 %vm3203_vm5, %v3122_v20  ;;  %2821 = vmatprep.mubr.f32.mxu0 %v3260_v34  ;;  %v3470_v37 = vand.u32 4294901760, %v869_v31 }
  0xad   : > { %2851 = vmatprep.mubr.f32.mxu1 %v3359_v5  ;;  %2836 = vmatprep.subr.msk.mxu0 %vm3199_vm4, %v3122_v20 }
  0xae   : > { %2837 = vmatpush3.msk.msra.mxu0 %vm3199_vm4, %v3122_v20  ;;  %2864 = vmatprep.subr.msk.mxu1 %vm3203_vm5, %v3122_v20 }
  0xaf   : > { %2822 = vmatmul.mubr.f32.gmra.mxu0 %v3275_v44  ;;  %2852 = vmatmul.mubr.f32.gmra.mxu1 %v3372_v8 }
  0xb0   : > { %2838 = vmatprep.mubr.f32.mxu0 %v3429_v27  ;;  %2865 = vmatpush3.msk.msra.mxu1 %vm3203_vm5, %v3122_v20 }
  0xb1   : > { %2868 = vmatprep.mubr.f32.mxu1 %v3385_v12  ;;  %2866 = vmatprep.subr.msk.mxu1 %vm3199_vm4, %v3122_v20 }
  0xb2   : > { %2854 = vmatprep.subr.mxu0 %v3223_v21  ;;  %2867 = vmatpush3.msk.msra.mxu1 %vm3199_vm4, %v3122_v20 }
  0xb3   : > { %2839 = vmatmul.mubr.f32.vlgmr.msra.gmra.mxu0 %v3447_v30  ;;  %2869 = vmatmul.mubr.f32.vlgmr.msra.gmra.mxu1 %v3395_v17 }
  0xb4   : > { %2855 = vmatpush3.msra.mxu0 %v3223_v21  ;;  %2841 = vmatprep.mubr.f32.mxu0 %v3459_v33  ;;  %v1488_v21 = vsub.f32 %v3435_v29, %v3462_v36 }
  0xb5   : > { %2871 = vmatprep.mubr.f32.mxu1 %v3406_v24  ;;  %2856 = vmatprep.subr.mxu0 %v3216_v19 }
  0xb6   : > { %2857 = vmatpush3.msra.mxu0 %v3216_v19  ;;  %2884 = vmatprep.subr.msk.mxu1 %vm3203_vm5, %v3122_v20  ;;  %v1494_v19 = vsub.f32 %v3453_v32, %v3473_v38  ;;  %v1489_v39 = vand.u32 4294901760, %v1488_v21 }
  0xb7   : > { %2842 = vmatmul.mubr.f32.gmra.mxu0 %v3470_v37  ;;  %2872 = vmatmul.mubr.f32.gmra.mxu1 %v3421_v26 }
  0xb8   : > { %2858 = vmatprep.mubr.f32.mxu0 %v3362_v6  ;;  %2885 = vmatpush3.msk.msra.mxu1 %vm3203_vm5, %v3122_v20  ;;  %v1495_v14 = vand.u32 4294901760, %v1494_v19 }
  0xb9   : > { %2888 = vmatprep.mubr.f32.mxu1 %v3340_v0  ;;  %2886 = vmatprep.subr.msk.mxu1 %vm3199_vm4, %v3122_v20 }
  0xba   : > { %2874 = vmatprep.subr.mxu0 %v3232_v23  ;;  %2887 = vmatpush3.msk.msra.mxu1 %vm3199_vm4, %v3122_v20 }
  0xbb   : > { %2859 = vmatmul.mubr.f32.vlgmr.msra.gmra.mxu0 %v3375_v9  ;;  %2889 = vmatmul.mubr.f32.vlgmr.msra.gmra.mxu1 %v3353_v4 }
  0xbc   : > { %2875 = vmatpush3.msra.mxu0 %v3232_v23  ;;  %2861 = vmatprep.mubr.f32.mxu0 %v3380_v11 }
  0xbd   : > { %2891 = vmatprep.mubr.f32.mxu1 %v3359_v5  ;;  %2876 = vmatprep.subr.mxu0 %v3226_v22 }
  0xbe   : > { %2877 = vmatpush3.msra.mxu0 %v3226_v22  ;;  %2904 = vmatprep.subr.mxu1 %v1489_v39 }
  0xbf   : > { %2862 = vmatmul.mubr.f32.gmra.mxu0 %v3392_v13  ;;  %2892 = vmatmul.mubr.f32.gmra.mxu1 %v3372_v8 }
  0xc0   : > { %2878 = vmatprep.mubr.f32.mxu0 %v3340_v0  ;;  %2905 = vmatpush3.msra.mxu1 %v1489_v39 }
  0xc1   : > { %2908 = vmatprep.mubr.f32.mxu1 %v3262_v35  ;;  %2906 = vmatprep.subr.mxu1 %v1495_v14 }
  0xc2   : > { %2894 = vmatprep.subr.mxu0 %v3210_v16  ;;  %2907 = vmatpush3.msra.mxu1 %v1495_v14 }
  0xc3   : > { %2879 = vmatmul.mubr.f32.vlgmr.msra.gmra.mxu0 %v3353_v4  ;;  %2909 = vmatmul.mubr.f32.vlgmr.msra.gmra.mxu1 %v3277_v45 }
  0xc4   : > { %2895 = vmatpush3.msra.mxu0 %v3210_v16  ;;  %2881 = vmatprep.mubr.f32.mxu0 %v3359_v5 }
  0xc5   : > { %2911 = vmatprep.mubr.f32.mxu1 %v3260_v34  ;;  %2896 = vmatprep.subr.mxu0 %v3208_v15 }
  0xc6   : > { %2897 = vmatpush3.msra.mxu0 %v3208_v15  ;;  %2924 = vmatprep.subr.mxu1 %v3210_v16 }
  0xc7   : > { %2882 = vmatmul.mubr.f32.gmra.mxu0 %v3372_v8  ;;  %2912 = vmatmul.mubr.f32.gmra.mxu1 %v3275_v44 }
  0xc8   : > { %2898 = vmatprep.mubr.f32.mxu0 %v3307_v53  ;;  %2925 = vmatpush3.msra.mxu1 %v3210_v16 }
  0xc9   : > { %2928 = vmatprep.mubr.f32.mxu1 %v3280_v46  ;;  %2926 = vmatprep.subr.mxu1 %v3208_v15 }
  0xca   : > { %2914 = vmatprep.subr.mxu0 %v3435_v29  ;;  %2927 = vmatpush3.msra.mxu1 %v3208_v15 }
  0xcb   : > { %2899 = vmatmul.mubr.f32.vlgmr.msra.gmra.mxu0 %v3323_v57  ;;  %2929 = vmatmul.mubr.f32.vlgmr.msra.gmra.mxu1 %v3302_v51 }
  0xcc   : > { %2915 = vmatpush3.msra.mxu0 %v3435_v29  ;;  %2901 = vmatprep.mubr.f32.mxu0 %v3328_v60 }
  0xcd   : > { %2931 = vmatprep.mubr.f32.mxu1 %v3283_v47  ;;  %2916 = vmatprep.subr.mxu0 %v3453_v32 }
  0xce   : > { %2917 = vmatpush3.msra.mxu0 %v3453_v32  ;;  %2944 = vmatprep.subr.mxu1 %v3210_v16 }
  0xcf   : > { %2902 = vmatmul.mubr.f32.gmra.mxu0 %v3338_v63  ;;  %2932 = vmatmul.mubr.f32.gmra.mxu1 %v3305_v52 }
  0xd0   : > { %2918 = vmatprep.mubr.f32.mxu0 %v3270_v41  ;;  %2945 = vmatpush3.msra.mxu1 %v3210_v16 }
  0xd1   : > { %2948 = vmatprep.mubr.f32.mxu1 %v3262_v35  ;;  %2946 = vmatprep.subr.mxu1 %v3208_v15 }
  0xd2   : > { %2934 = vmatprep.subr.mxu0 %v3462_v36  ;;  %2947 = vmatpush3.msra.mxu1 %v3208_v15 }
  0xd3   : > { %2919 = vmatmul.mubr.f32.vlgmr.msra.gmra.mxu0 %v3289_v49  ;;  %2949 = vmatmul.mubr.f32.vlgmr.msra.gmra.mxu1 %v3277_v45 }
  0xd4   : > { %2935 = vmatpush3.msra.mxu0 %v3462_v36  ;;  %2921 = vmatprep.mubr.f32.mxu0 %v3267_v40 }
  0xd5   : > { %2951 = vmatprep.mubr.f32.mxu1 %v3260_v34  ;;  %2936 = vmatprep.subr.mxu0 %v3473_v38 }
  0xd6   : > { %2937 = vmatpush3.msra.mxu0 %v3473_v38  ;;  %2964 = vmatprep.subr.mxu1 %v1489_v39 }
  0xd7   : > { %2922 = vmatmul.mubr.f32.gmra.mxu0 %v3286_v48  ;;  %2952 = vmatmul.mubr.f32.gmra.mxu1 %v3275_v44 }
  0xd8   : > { %2938 = vmatprep.mubr.f32.mxu0 %v3262_v35  ;;  %2965 = vmatpush3.msra.mxu1 %v1489_v39 }
  0xd9   : > { %2968 = vmatprep.mubr.f32.mxu1 %v3340_v0  ;;  %2966 = vmatprep.subr.mxu1 %v1495_v14 }
  0xda   : > { %2954 = vmatprep.subr.mxu0 %v3210_v16  ;;  %2967 = vmatpush3.msra.mxu1 %v1495_v14 }
  0xdb   : > { %2939 = vmatmul.mubr.f32.vlgmr.msra.gmra.mxu0 %v3277_v45  ;;  %2969 = vmatmul.mubr.f32.vlgmr.msra.gmra.mxu1 %v3353_v4 }
  0xdc   : > { %2955 = vmatpush3.msra.mxu0 %v3210_v16  ;;  %2941 = vmatprep.mubr.f32.mxu0 %v3260_v34 }
  0xdd   : > { %2971 = vmatprep.mubr.f32.mxu1 %v3359_v5  ;;  %2956 = vmatprep.subr.mxu0 %v3208_v15 }
  0xde   : > { %2957 = vmatpush3.msra.mxu0 %v3208_v15  ;;  %2984 = vmatprep.subr.mxu1 %v3210_v16 }
  0xdf   : > { %2942 = vmatmul.mubr.f32.gmra.mxu0 %v3275_v44  ;;  %2972 = vmatmul.mubr.f32.gmra.mxu1 %v3372_v8 }
  0xe0   : > { %2958 = vmatprep.mubr.f32.mxu0 %v3429_v27  ;;  %2985 = vmatpush3.msra.mxu1 %v3210_v16 }
  0xe1   : > { %2988 = vmatprep.mubr.f32.mxu1 %v3385_v12  ;;  %2986 = vmatprep.subr.mxu1 %v3208_v15 }
  0xe2   : > { %2974 = vmatprep.subr.mxu0 %v3435_v29  ;;  %2987 = vmatpush3.msra.mxu1 %v3208_v15 }
  0xe3   : > { %2959 = vmatmul.mubr.f32.vlgmr.msra.gmra.mxu0 %v3447_v30  ;;  %2989 = vmatmul.mubr.f32.vlgmr.msra.gmra.mxu1 %v3395_v17 }
  0xe4   : > { %2975 = vmatpush3.msra.mxu0 %v3435_v29  ;;  %2961 = vmatprep.mubr.f32.mxu0 %v3459_v33 }
  0xe5   : > { %2991 = vmatprep.mubr.f32.mxu1 %v3406_v24  ;;  %2976 = vmatprep.subr.mxu0 %v3453_v32 }
  0xe6   : > { %2977 = vmatpush3.msra.mxu0 %v3453_v32  ;;  %3004 = vmatprep.subr.mxu1 %v3210_v16 }
  0xe7   : > { %2962 = vmatmul.mubr.f32.gmra.mxu0 %v3470_v37  ;;  %2992 = vmatmul.mubr.f32.gmra.mxu1 %v3421_v26 }
  0xe8   : > { %2978 = vmatprep.mubr.f32.mxu0 %v3362_v6  ;;  %3005 = vmatpush3.msra.mxu1 %v3210_v16 }
  0xe9   : > { %3008 = vmatprep.mubr.f32.mxu1 %v3340_v0  ;;  %3006 = vmatprep.subr.mxu1 %v3208_v15 }
  0xea   : > { %2994 = vmatprep.subr.mxu0 %v3462_v36  ;;  %3007 = vmatpush3.msra.mxu1 %v3208_v15 }
  0xeb   : > { %2979 = vmatmul.mubr.f32.vlgmr.msra.gmra.mxu0 %v3375_v9  ;;  %3009 = vmatmul.mubr.f32.vlgmr.msra.gmra.mxu1 %v3353_v4 }
  0xec   : > { %2995 = vmatpush3.msra.mxu0 %v3462_v36  ;;  %2981 = vmatprep.mubr.f32.mxu0 %v3380_v11 }
  0xed   : > { %3011 = vmatprep.mubr.f32.mxu1 %v3359_v5  ;;  %2996 = vmatprep.subr.mxu0 %v3473_v38 }
  0xee   : > { %2997 = vmatpush3.msra.mxu0 %v3473_v38 }
  0xef   : > { %2982 = vmatmul.mubr.f32.gmra.mxu0 %v3392_v13  ;;  %3012 = vmatmul.mubr.f32.gmra.mxu1 %v3372_v8 }
  0xf0   : > { %2998 = vmatprep.mubr.f32.mxu0 %v3340_v0 }
  0xf3   : > { %2999 = vmatmul.mubr.f32.vlgmr.msra.gmra.mxu0 %v3353_v4 }
  0xf4   : > { %3001 = vmatprep.mubr.f32.mxu0 %v3359_v5 }
  0xf7   : > { %3002 = vmatmul.mubr.f32.gmra.mxu0 %v3372_v8 }
 0x153   : > { %v2790_v10 = vpop.f32.mrf.mxu1 }
 0x155   : > { %v358_v15 = vpop.f32.mrf.mxu1 }
 0x157   : > { %v2793_v16 = vpop.f32.mrf.mxu1 }
 0x159   : > { %v370_v20 = vpop.f32.mrf.mxu1 }
 0x15b   : > { %v2780_v22 = vpop.f32.mrf.mxu0  ;;  %v2810_v23 = vpop.f32.mrf.mxu1 }
 0x15c   : > { %v365_v46 = vadd.f32 %v2790_v10, %v2780_v22 }
 0x15d   : > { %v249_v34 = vpop.f32.mrf.mxu0  ;;  %v544_v35 = vpop.f32.mrf.mxu1 }
 0x15e   : > { %v359_v49 = vadd.f32 %v358_v15, %v249_v34 }
 0x15f   : > { %v2783_v40 = vpop.f32.mrf.mxu0  ;;  %v2813_v41 = vpop.f32.mrf.mxu1 }
 0x160   : > { %v377_v53 = vadd.f32 %v2793_v16, %v2783_v40 }
 0x161   : > { %v269_v42 = vpop.f32.mrf.mxu0  ;;  %v560_v43 = vpop.f32.mrf.mxu1 }
 0x162   : > { %v371_v57 = vadd.f32 %v370_v20, %v269_v42 }
 0x163   : > { %v2800_v44 = vpop.f32.mrf.mxu0  ;;  %v2830_v45 = vpop.f32.mrf.mxu1 }
 0x164   : > { %v458_v50 = vadd.f32 %v2800_v44, %v365_v46 }
 0x165   : > { %v450_v47 = vpop.f32.mrf.mxu0  ;;  %v732_v48 = vpop.f32.mrf.mxu1 }
 0x166   : > { %v451_v54 = vadd.f32 %v450_v47, %v359_v49  ;;  %v553_v59 = vadd.f32 %v2810_v23, %v458_v50 }
 0x167   : > { %v2803_v51 = vpop.f32.mrf.mxu0  ;;  %v2833_v52 = vpop.f32.mrf.mxu1 }
 0x168   : > { %v472_v58 = vadd.f32 %v2803_v51, %v377_v53  ;;  %v545_v0 = vadd.f32 %v544_v35, %v451_v54 }
 0x169   : > { %v464_v55 = vpop.f32.mrf.mxu0  ;;  %v744_v56 = vpop.f32.mrf.mxu1 }
 0x16a   : > { %v465_v62 = vadd.f32 %v464_v55, %v371_v57  ;;  %v569_v5 = vadd.f32 %v2813_v41, %v472_v58 }
 0x16b   : > { %v2820_v60 = vpop.f32.mrf.mxu0  ;;  %v2850_v61 = vpop.f32.mrf.mxu1 }
 0x16c   : > { %v650_v63 = vadd.f32 %v2820_v60, %v553_v59  ;;  %v561_v11 = vadd.f32 %v560_v43, %v465_v62 }
 0x16d   : > { %v643_v1 = vpop.f32.mrf.mxu0  ;;  %v951_v2 = vpop.f32.mrf.mxu1 }
 0x16e   : > { %v739_v3 = vadd.f32 %v2830_v45, %v650_v63  ;;  %v644_v4 = vadd.f32 %v643_v1, %v545_v0 }
 0x16f   : > { %v2823_v6 = vpop.f32.mrf.mxu0  ;;  %v2853_v7 = vpop.f32.mrf.mxu1 }
 0x170   : > { %756 = vst.msk [vmem:[%s3601_s26 + $0x20] sm:$0xff] %vm754_vm7, %v739_v3  ;;  %v733_v8 = vadd.f32 %v732_v48, %v644_v4  ;;  %v662_v9 = vadd.f32 %v2823_v6, %v569_v5 }
 0x171   : > { %v655_v12 = vpop.f32.mrf.mxu0  ;;  %v963_v13 = vpop.f32.mrf.mxu1 }
 0x172   : > { %755 = vst.msk [vmem:[%s3601_s26] sm:$0xff] %vm754_vm7, %v733_v8  ;;  %v751_v17 = vadd.f32 %v2833_v52, %v662_v9  ;;  %v656_v18 = vadd.f32 %v655_v12, %v561_v11 }
 0x173   : > { %v2840_v24 = vpop.f32.mrf.mxu0  ;;  %v2870_v25 = vpop.f32.mrf.mxu1 }
 0x174   : > { %758 = vst.msk [vmem:[%s3601_s26 + $0x60] sm:$0xff] %vm754_vm7, %v751_v17  ;;  %v745_v26 = vadd.f32 %v744_v56, %v656_v18  ;;  %v958_v37 = vadd.f32 %v2850_v61, %v2840_v24 }
 0x175   : > { %v842_v27 = vpop.f32.mrf.mxu0  ;;  %v1137_v28 = vpop.f32.mrf.mxu1 }
 0x176   : > { %757 = vst.msk [vmem:[%s3601_s26 + $0x40] sm:$0xff] %vm754_vm7, %v745_v26  ;;  %v952_v19 = vadd.f32 %v951_v2, %v842_v27 }
 0x177   : > { %v2843_v29 = vpop.f32.mrf.mxu0  ;;  %v2873_v30 = vpop.f32.mrf.mxu1 }
 0x178   : > { %v970_v15 = vadd.f32 %v2853_v7, %v2843_v29 }
 0x179   : > { %v862_v31 = vpop.f32.mrf.mxu0  ;;  %v1153_v32 = vpop.f32.mrf.mxu1 }
 0x17a   : > { %v964_v23 = vadd.f32 %v963_v13, %v862_v31 }
 0x17b   : > { %v2860_v33 = vpop.f32.mrf.mxu0  ;;  %v2890_v36 = vpop.f32.mrf.mxu1 }
 0x17c   : > { %v1051_v39 = vadd.f32 %v2860_v33, %v958_v37 }
 0x17d   : > { %v1043_v38 = vpop.f32.mrf.mxu0  ;;  %v1325_v21 = vpop.f32.mrf.mxu1 }
 0x17e   : > { %v1044_v16 = vadd.f32 %v1043_v38, %v952_v19  ;;  %v1146_v35 = vadd.f32 %v2870_v25, %v1051_v39 }
 0x17f   : > { %v2863_v14 = vpop.f32.mrf.mxu0  ;;  %v2893_v10 = vpop.f32.mrf.mxu1 }
 0x180   : > { %v1065_v34 = vadd.f32 %v2863_v14, %v970_v15  ;;  %v1138_v44 = vadd.f32 %v1137_v28, %v1044_v16 }
 0x181   : > { %v1057_v20 = vpop.f32.mrf.mxu0  ;;  %v1337_v22 = vpop.f32.mrf.mxu1 }
 0x182   : > { %v1058_v42 = vadd.f32 %v1057_v20, %v964_v23  ;;  %v1162_v49 = vadd.f32 %v2873_v30, %v1065_v34 }
 0x183   : > { %v2880_v40 = vpop.f32.mrf.mxu0  ;;  %v2910_v41 = vpop.f32.mrf.mxu1 }
 0x184   : > { %v1243_v43 = vadd.f32 %v2880_v40, %v1146_v35  ;;  %v1154_v54 = vadd.f32 %v1153_v32, %v1058_v42 }
 0x185   : > { %v1236_v45 = vpop.f32.mrf.mxu0  ;;  %v1532_v46 = vpop.f32.mrf.mxu1 }
 0x186   : > { %v1332_v47 = vadd.f32 %v2890_v36, %v1243_v43  ;;  %v1237_v48 = vadd.f32 %v1236_v45, %v1138_v44 }
 0x187   : > { %v2883_v50 = vpop.f32.mrf.mxu0  ;;  %v2913_v51 = vpop.f32.mrf.mxu1 }
 0x188   : > { %2611 = vst.msk [vmem:[%s3601_s26 + $0x28] sm:$0xff] %vm754_vm7, %v1332_v47  ;;  %v1326_v52 = vadd.f32 %v1325_v21, %v1237_v48  ;;  %v1255_v53 = vadd.f32 %v2883_v50, %v1162_v49 }
 0x189   : > { %v1248_v55 = vpop.f32.mrf.mxu0  ;;  %v1544_v56 = vpop.f32.mrf.mxu1 }
 0x18a   : > { %2610 = vst.msk [vmem:[%s3601_s26 + $0x8] sm:$0xff] %vm754_vm7, %v1326_v52  ;;  %v1344_v57 = vadd.f32 %v2893_v10, %v1255_v53  ;;  %v1249_v58 = vadd.f32 %v1248_v55, %v1154_v54 }
 0x18b   : > { %v2900_v59 = vpop.f32.mrf.mxu0  ;;  %v2930_v60 = vpop.f32.mrf.mxu1 }
 0x18c   : > { %2613 = vst.msk [vmem:[%s3601_s26 + $0x68] sm:$0xff] %vm754_vm7, %v1344_v57  ;;  %v1338_v61 = vadd.f32 %v1337_v22, %v1249_v58  ;;  %v1539_v6 = vadd.f32 %v2910_v41, %v2900_v59 }
 0x18d   : > { %v1423_v62 = vpop.f32.mrf.mxu0  ;;  %v1718_v63 = vpop.f32.mrf.mxu1 }
 0x18e   : > { %2612 = vst.msk [vmem:[%s3601_s26 + $0x48] sm:$0xff] %vm754_vm7, %v1338_v61  ;;  %v1533_v9 = vadd.f32 %v1532_v46, %v1423_v62 }
 0x18f   : > { %v2903_v0 = vpop.f32.mrf.mxu0  ;;  %v2933_v1 = vpop.f32.mrf.mxu1 }
 0x190   : > { %v1551_v17 = vadd.f32 %v2913_v51, %v2903_v0 }
 0x191   : > { %v1443_v2 = vpop.f32.mrf.mxu0  ;;  %v1734_v3 = vpop.f32.mrf.mxu1 }
 0x192   : > { %v1545_v26 = vadd.f32 %v1544_v56, %v1443_v2 }
 0x193   : > { %v2920_v4 = vpop.f32.mrf.mxu0  ;;  %v2950_v5 = vpop.f32.mrf.mxu1 }
 0x194   : > { %v1632_v11 = vadd.f32 %v2920_v4, %v1539_v6 }
 0x195   : > { %v1624_v7 = vpop.f32.mrf.mxu0  ;;  %v1906_v8 = vpop.f32.mrf.mxu1 }
 0x196   : > { %v1625_v18 = vadd.f32 %v1624_v7, %v1533_v9  ;;  %v1727_v28 = vadd.f32 %v2930_v60, %v1632_v11 }
 0x197   : > { %v2923_v12 = vpop.f32.mrf.mxu0  ;;  %v2953_v13 = vpop.f32.mrf.mxu1 }
 0x198   : > { %v1646_v27 = vadd.f32 %v2923_v12, %v1551_v17  ;;  %v1719_v33 = vadd.f32 %v1718_v63, %v1625_v18 }
 0x199   : > { %v1638_v24 = vpop.f32.mrf.mxu0  ;;  %v1918_v25 = vpop.f32.mrf.mxu1 }
 0x19a   : > { %v1639_v31 = vadd.f32 %v1638_v24, %v1545_v26  ;;  %v1743_v19 = vadd.f32 %v2933_v1, %v1646_v27 }
 0x19b   : > { %v2940_v29 = vpop.f32.mrf.mxu0  ;;  %v2970_v30 = vpop.f32.mrf.mxu1 }
 0x19c   : > { %v1824_v32 = vadd.f32 %v2940_v29, %v1727_v28  ;;  %v1735_v16 = vadd.f32 %v1734_v3, %v1639_v31 }
 0x19d   : > { %v1817_v36 = vpop.f32.mrf.mxu0  ;;  %v2113_v37 = vpop.f32.mrf.mxu1 }
 0x19e   : > { %v1913_v38 = vadd.f32 %v2950_v5, %v1824_v32  ;;  %v1818_v21 = vadd.f32 %v1817_v36, %v1719_v33 }
 0x19f   : > { %v2943_v39 = vpop.f32.mrf.mxu0  ;;  %v2973_v14 = vpop.f32.mrf.mxu1 }
 0x1a0   : > { %2615 = vst.msk [vmem:[%s3601_s26 + $0x30] sm:$0xff] %vm754_vm7, %v1913_v38  ;;  %v1907_v10 = vadd.f32 %v1906_v8, %v1818_v21  ;;  %v1836_v15 = vadd.f32 %v2943_v39, %v1743_v19 }
 0x1a1   : > { %v1829_v20 = vpop.f32.mrf.mxu0  ;;  %v2125_v22 = vpop.f32.mrf.mxu1 }
 0x1a2   : > { %2614 = vst.msk [vmem:[%s3601_s26 + $0x10] sm:$0xff] %vm754_vm7, %v1907_v10  ;;  %v1925_v23 = vadd.f32 %v2953_v13, %v1836_v15  ;;  %v1830_v34 = vadd.f32 %v1829_v20, %v1735_v16 }
 0x1a3   : > { %v2960_v35 = vpop.f32.mrf.mxu0  ;;  %v2990_v40 = vpop.f32.mrf.mxu1 }
 0x1a4   : > { %2617 = vst.msk [vmem:[%s3601_s26 + $0x70] sm:$0xff] %vm754_vm7, %v1925_v23  ;;  %v1919_v41 = vadd.f32 %v1918_v25, %v1830_v34  ;;  %v2120_v49 = vadd.f32 %v2970_v30, %v2960_v35 }
 0x1a5   : > { %v2004_v42 = vpop.f32.mrf.mxu0  ;;  %v2299_v43 = vpop.f32.mrf.mxu1 }
 0x1a6   : > { %2616 = vst.msk [vmem:[%s3601_s26 + $0x50] sm:$0xff] %vm754_vm7, %v1919_v41  ;;  %v2114_v51 = vadd.f32 %v2113_v37, %v2004_v42 }
 0x1a7   : > { %v2963_v44 = vpop.f32.mrf.mxu0  ;;  %v2993_v45 = vpop.f32.mrf.mxu1 }
 0x1a8   : > { %v2132_v55 = vadd.f32 %v2973_v14, %v2963_v44 }
 0x1a9   : > { %v2024_v46 = vpop.f32.mrf.mxu0  ;;  %v2315_v47 = vpop.f32.mrf.mxu1 }
 0x1aa   : > { %v2126_v58 = vadd.f32 %v2125_v22, %v2024_v46 }
 0x1ab   : > { %v2980_v48 = vpop.f32.mrf.mxu0  ;;  %v3010_v53 = vpop.f32.mrf.mxu1 }
 0x1ac   : > { %v2213_v52 = vadd.f32 %v2980_v48, %v2120_v49 }
 0x1ad   : > { %v2205_v50 = vpop.f32.mrf.mxu0  ;;  %v2487_v61 = vpop.f32.mrf.mxu1 }
 0x1ae   : > { %v2206_v56 = vadd.f32 %v2205_v50, %v2114_v51  ;;  %v2308_v60 = vadd.f32 %v2990_v40, %v2213_v52 }
 0x1af   : > { %v2983_v54 = vpop.f32.mrf.mxu0  ;;  %v3013_v6 = vpop.f32.mrf.mxu1 }
 0x1b0   : > { %v2227_v59 = vadd.f32 %v2983_v54, %v2132_v55  ;;  %v2300_v1 = vadd.f32 %v2299_v43, %v2206_v56 }
 0x1b1   : > { %v2219_v57 = vpop.f32.mrf.mxu0  ;;  %v2499_v18 = vpop.f32.mrf.mxu1 }
 0x1b2   : > { %v2220_v63 = vadd.f32 %v2219_v57, %v2126_v58  ;;  %v2324_v5 = vadd.f32 %v2993_v45, %v2227_v59 }
 0x1b3   : > { %v3000_v62 = vpop.f32.mrf.mxu0 }
 0x1b4   : > { %v2405_v0 = vadd.f32 %v3000_v62, %v2308_v60  ;;  %v2316_v11 = vadd.f32 %v2315_v47, %v2220_v63 }
 0x1b5   : > { %v2398_v2 = vpop.f32.mrf.mxu0 }
 0x1b6   : > { %v2494_v3 = vadd.f32 %v3010_v53, %v2405_v0  ;;  %v2399_v4 = vadd.f32 %v2398_v2, %v2300_v1 }
 0x1b7   : > { %v3003_v7 = vpop.f32.mrf.mxu0 }
 0x1b8   : > { %2619 = vst.msk [vmem:[%s3601_s26 + $0x38] sm:$0xff] %vm754_vm7, %v2494_v3  ;;  %v2488_v8 = vadd.f32 %v2487_v61, %v2399_v4  ;;  %v2417_v9 = vadd.f32 %v3003_v7, %v2324_v5 }
 0x1b9   : > { %v2410_v12 = vpop.f32.mrf.mxu0 }
 0x1ba   : > { %2618 = vst.msk [vmem:[%s3601_s26 + $0x18] sm:$0xff] %vm754_vm7, %v2488_v8  ;;  %v2506_v13 = vadd.f32 %v3013_v6, %v2417_v9  ;;  %v2411_v17 = vadd.f32 %v2410_v12, %v2316_v11 }
 0x1bc   : > { %2621 = vst.msk [vmem:[%s3601_s26 + $0x78] sm:$0xff] %vm754_vm7, %v2506_v13  ;;  %v2500_v24 = vadd.f32 %v2499_v18, %v2411_v17 }
 0x1be   : > { %2620 = vst.msk [vmem:[%s3601_s26 + $0x58] sm:$0xff] %vm754_vm7, %v2500_v24 }
 0x1bf   : > { %3071 = shalt.err (!%p3068_p3)
}
 0x1c0   : > { %s3072_s13 = scalar_lea.hbm %s3636_s2, 2048  ;;  %s3076_s19 = scalar_lea.hbm %s3687_s1, 4096 }
 0x1c1   : > { %p3073_p4 = scmp.ne.s32.totalorder %s3636_s2, %s3072_s13  ;;  %p3077_p9 = scmp.lt.s32.totalorder %s3636_s2, %s3687_s1 }
 0x1c2   : > { %p3078_p10 = scmp.lt.s32.totalorder %s3076_s19, %s3072_s13 }
 0x1c3   : > { %p3074_p7 = pnand %p3073_p4, %p3174_p5 }
 0x1c4   : > { %p3079_p11 = por %p3078_p10, %p3077_p9 }
 0x1c5   : > { %p3075_p8 = pneg %p3074_p7 }
 0x1c7   : > { %p3080_p12 = pnand %p3079_p11, %p3075_p8 }
 0x1c9   : > { %3083 = shalt.err (!%p3080_p12)
}
 0x1ca   : > { %s3124_s22 = smov 128   ;;  %s3125_s23 = smov 8  }
 0x1cb   : > { %3014 = dma.vmem_to_hbm [thread:$0]  (%p3174_p5), %s3638_s28, 2048, %s3636_s2, %s3646_s3, %s3124_s22, %s3124_s22, %s3125_s23  }
 0x1cc PF: > { %p3020_p13 = scmp.ge.s32.totalorder %s3118_s9, 2  ;;  %s2544_s24 = sand.u32 1, %s3106_s6  }
 0x1cd   : > { %s2545_s25 = scalar_lea.sflag [#allocation3], %s2544_s24 }
 0x1ce   : > { %p3017_p0 = pnand %p3020_p13, %p3178_p6 }
 0x1d0   : > { %p3018_p1 = pneg %p3017_p0 }
 0x1d2   : > { %3101 = dma.done.wait (%p3018_p1), %s2545_s25, 2048  }
 0x1d3   : > { %3103 = vsyncadd (%p3018_p1), %s2545_s25, 4294965248  ;;  %p11_p2 = scmp.ge.s32.totalorder %s3161_s12, 4   ;;  %s3694_s6 = smov %s3110_s7 }
 0x1d4   : > { %s3695_s7 = smov %s3114_s8  ;;  %s3696_s8 = smov %s3172_s15 }
 0x1d5   : > { %s3697_s9 = smov %s3161_s12  ;;  %13 = sbr.rel (!%p11_p2) target bundleno = 3 (0x3), region = 62 }
 0x1da   :  { %2550 = vsyncpa [#allocation3], 1 }
 0x1db   :  { %2552 = vsyncpa [#allocation3 + $0x1], 1 }

</bundles_post_ra>
